<compile_context>
chip_gen: v7x
topology: tpu7x:2x2x1
jax: 0.10.0
libtpu: 0.0.40
codegen_flags: <defaults>
</compile_context>

<pallas_src>
import jax
import jax.numpy as jnp
from jax.experimental import pallas as pl
from jax.experimental.pallas import tpu as pltpu

ROW_ALIGN = 16  # bf16 sublane packing: 16 rows per packed vreg


def _round_up(n, m):
    return ((n + m - 1) // m) * m


def _min_grid_steps():
    """v7x has 2 TensorCores per chip; the 'parallel' batch axis only uses the
    second TC if the grid has >= 2 iterations. On 1-TC chips (v5e/v6e) a
    single large step is cheapest, so no minimum there."""
    try:
        kind = jax.devices()[0].device_kind.lower()
    except Exception:
        kind = ""
    return 2 if "v7" in kind else 1


def policy_fwd_kernel(x_ref, w1_ref, b1_ref, w2_ref, b2_ref, w3_ref, b3_ref, o_ref):
    # Hot path: 3 bf16 MXU matmuls with f32 accumulation, fused bias-add +
    # tanh epilogues (VPU/EUP). Everything for one batch tile is VMEM-resident.
    x = x_ref[...]  # already bf16 (cast once in the wrapper)
    h1 = jnp.tanh(
        jnp.dot(x, w1_ref[...], preferred_element_type=jnp.float32) + b1_ref[...]
    ).astype(jnp.bfloat16)
    h2 = jnp.tanh(
        jnp.dot(h1, w2_ref[...], preferred_element_type=jnp.float32) + b2_ref[...]
    ).astype(jnp.bfloat16)
    a = jnp.tanh(
        jnp.dot(h2, w3_ref[...], preferred_element_type=jnp.float32) + b3_ref[...]
    )
    # The PyTorch module applies tanh twice at the head (activation + torch.tanh).
    o_ref[...] = jnp.tanh(a)


def init_params(key, state_dim, action_dim, hidden=(400, 300)):
    """Unpadded f32 params (nn.Linear-equivalent, stored as [in, out])."""
    ks = jax.random.split(key, 6)
    h1, h2 = hidden

    def lin(kw, kb, fan_in, fan_out):
        # PyTorch Linear default init: U(-1/sqrt(fan_in), 1/sqrt(fan_in))
        bound = 1.0 / jnp.sqrt(jnp.float32(fan_in))
        w = jax.random.uniform(kw, (fan_in, fan_out), jnp.float32, -bound, bound)
        b = jax.random.uniform(kb, (1, fan_out), jnp.float32, -bound, bound)
        return w, b

    w1, b1 = lin(ks[0], ks[1], state_dim, h1)
    w2, b2 = lin(ks[2], ks[3], h1, h2)
    w3, b3 = lin(ks[4], ks[5], h2, action_dim)
    return {"w1": w1, "b1": b1, "w2": w2, "b2": b2, "w3": w3, "b3": b3}


def prepare_params(params):
    """One-time host-side prep: zero-pad out-features to 128-lane multiples and
    cast weights to bf16 (MXU-native). Zero padding keeps the unpadded lanes
    bit-exact (tanh(0) = 0 propagates zeros through the padded columns)."""
    def pad2(a, rows, cols):
        return jnp.pad(a, ((0, rows - a.shape[0]), (0, cols - a.shape[1])))

    s, h1 = params["w1"].shape
    _, h2 = params["w2"].shape
    _, ad = params["w3"].shape
    h1p, h2p, adp = _round_up(h1, 128), _round_up(h2, 128), _round_up(ad, 128)

    return {
        "w1": pad2(params["w1"], s, h1p).astype(jnp.bfloat16),
        "b1": pad2(params["b1"], 1, h1p),
        "w2": pad2(params["w2"], h1p, h2p).astype(jnp.bfloat16),
        "b2": pad2(params["b2"], 1, h2p),
        "w3": pad2(params["w3"], h2p, adp).astype(jnp.bfloat16),
        "b3": pad2(params["b3"], 1, adp),
        "action_dim": ad,
    }


def policy_forward(x, pp, *, max_batch_tile=1024):
    """x: [B, state_dim] f32; pp: output of prepare_params. Returns [B, action_dim] f32."""
    w1, b1 = pp["w1"], pp["b1"]
    w2, b2 = pp["w2"], pp["b2"]
    w3, b3 = pp["w3"], pp["b3"]
    action_dim = pp["action_dim"]

    B, S = x.shape
    H1P, H2P, ADP = w1.shape[1], w2.shape[1], w3.shape[1]

    # Batch tile: big enough to amortize the ~0.35 us per-grid-step overhead,
    # small enough that every TensorCore sees a grid step on v7x. The working
    # set stays a few MiB for TB <= 2048, so no vmem_limit override is needed.
    Bp0 = _round_up(B, ROW_ALIGN)
    TB = min(max_batch_tile, Bp0)
    min_steps = _min_grid_steps()
    if min_steps > 1 and Bp0 >= min_steps * ROW_ALIGN:
        TB = min(TB, _round_up(pl.cdiv(Bp0, min_steps), ROW_ALIGN))
    Bp = _round_up(B, TB)

    if Bp != B:
        x = jnp.pad(x, ((0, Bp - B), (0, 0)))
    # Cast activations to bf16 once here: halves x DMA bytes and removes the
    # in-kernel VPU cast (weights are already bf16 from prepare_params).
    x = x.astype(jnp.bfloat16)

    grid = (Bp // TB,)
    resident = lambda i: (0, 0)  # constant block index -> DMA'd once, VMEM-resident

    flops = 2 * Bp * (S * H1P + H1P * H2P + H2P * ADP)
    transcendentals = Bp * (H1P + H2P + 2 * ADP)
    bytes_accessed = (
        Bp * S * 2                                  # x (bf16)
        + (S * H1P + H1P * H2P + H2P * ADP) * 2     # weights (bf16)
        + (H1P + H2P + ADP) * 4                     # biases (f32)
        + Bp * ADP * 4                              # out (f32)
    )

    out = pl.pallas_call(
        policy_fwd_kernel,
        out_shape=jax.ShapeDtypeStruct((Bp, ADP), jnp.float32),
        grid=grid,
        in_specs=[
            pl.BlockSpec((TB, S), lambda i: (i, 0)),   # x: batch-tiled
            pl.BlockSpec((S, H1P), resident),          # w1
            pl.BlockSpec((1, H1P), resident),          # b1
            pl.BlockSpec((H1P, H2P), resident),        # w2
            pl.BlockSpec((1, H2P), resident),          # b2
            pl.BlockSpec((H2P, ADP), resident),        # w3
            pl.BlockSpec((1, ADP), resident),          # b3
        ],
        out_specs=pl.BlockSpec((TB, ADP), lambda i: (i, 0)),
        compiler_params=pltpu.CompilerParams(
            dimension_semantics=("parallel",),  # batch tiles independent (2 TCs on v7x)
        ),
        cost_estimate=pl.CostEstimate(
            flops=flops,
            transcendentals=transcendentals,
            bytes_accessed=bytes_accessed,
        ),
    )(x, w1, b1, w2, b2, w3, b3)

    return out[:B, :action_dim]


# ---------------------------- references ----------------------------

def policy_forward_ref_f32(x, p):
    h1 = jnp.tanh(x @ p["w1"] + p["b1"])
    h2 = jnp.tanh(h1 @ p["w2"] + p["b2"])
    a = jnp.tanh(h2 @ p["w3"] + p["b3"])
    return jnp.tanh(a)


def policy_forward_ref_bf16(x, p):
    """Mirrors the kernel's precision: bf16 matmul inputs, f32 accumulation."""
    bf, f32 = jnp.bfloat16, jnp.float32
    h1 = jnp.tanh(jnp.dot(x.astype(bf), p["w1"].astype(bf),
                          preferred_element_type=f32) + p["b1"])
    h2 = jnp.tanh(jnp.dot(h1.astype(bf), p["w2"].astype(bf),
                          preferred_element_type=f32) + p["b2"])
    a = jnp.tanh(jnp.dot(h2.astype(bf), p["w3"].astype(bf),
                         preferred_element_type=f32) + p["b3"])
    return jnp.tanh(a)


if __name__ == "__main__":
    key = jax.random.PRNGKey(0)
    k_x, k_p, k_x2 = jax.random.split(key, 3)

    batch, state_dim, action_dim = 8, 16, 8   # small shapes consistent with the module
    params = init_params(k_p, state_dim, action_dim, hidden=(400, 300))
    pparams = prepare_params(params)          # pad + bf16-cast once (host side)

    # Small-batch run (single tile).
    x = jax.random.normal(k_x, (batch, state_dim), jnp.float32)
    out = jax.block_until_ready(policy_forward(x, pparams))
    assert out.shape == (batch, action_dim)
    assert jnp.allclose(out, policy_forward_ref_bf16(x, params), atol=1e-3, rtol=1e-3), \
        "mismatch vs bf16-precision reference"
    assert jnp.allclose(out, policy_forward_ref_f32(x, params), atol=5e-2, rtol=5e-2), \
        "mismatch vs f32 reference"

    # Larger batch exercises the batch grid with resident weights
    # (1 step of 512 on v5e/v6e, 2 parallel steps of 256 on v7x).
    x2 = jax.random.normal(k_x2, (512, state_dim), jnp.float32)
    out2 = jax.block_until_ready(policy_forward(x2, pparams))
    assert out2.shape == (512, action_dim)
    assert jnp.allclose(out2, policy_forward_ref_bf16(x2, params), atol=1e-3, rtol=1e-3), \
        "mismatch vs bf16-precision reference (batched)"

    print("KERNEL_OK")
</pallas_src>

<mosaic_0001>
module attributes {stable_mosaic.version = 11 : i64} {
  func.func @policy_fwd_kernel(%arg0: i32, %arg1: memref<16x16xbf16, #tpu.memory_space<vmem>>, %arg2: memref<16x512xbf16, #tpu.memory_space<vmem>>, %arg3: memref<1x512xf32, #tpu.memory_space<vmem>>, %arg4: memref<512x384xbf16, #tpu.memory_space<vmem>>, %arg5: memref<1x384xf32, #tpu.memory_space<vmem>>, %arg6: memref<384x128xbf16, #tpu.memory_space<vmem>>, %arg7: memref<1x128xf32, #tpu.memory_space<vmem>>, %arg8: memref<16x128xf32, #tpu.memory_space<vmem>>) attributes {dimension_semantics = [#tpu.dimension_semantics<parallel>], iteration_bounds = array<i64: 1>, scalar_prefetch = 0 : i64, scratch_operands = 0 : i64, tpu.core_type = #tpu.core_type<tc>, window_params = [{transform_indices = @transform_0, window_bounds = array<i64: 16, 16>}, {pipeline_mode = #tpu.pipeline_mode<synchronous>, transform_indices = @transform_1, window_bounds = array<i64: 16, 512>}, {pipeline_mode = #tpu.pipeline_mode<synchronous>, transform_indices = @transform_2, window_bounds = array<i64: 1, 512>}, {pipeline_mode = #tpu.pipeline_mode<synchronous>, transform_indices = @transform_3, window_bounds = array<i64: 512, 384>}, {pipeline_mode = #tpu.pipeline_mode<synchronous>, transform_indices = @transform_4, window_bounds = array<i64: 1, 384>}, {pipeline_mode = #tpu.pipeline_mode<synchronous>, transform_indices = @transform_5, window_bounds = array<i64: 384, 128>}, {pipeline_mode = #tpu.pipeline_mode<synchronous>, transform_indices = @transform_6, window_bounds = array<i64: 1, 128>}, {transform_indices = @transform_7, window_bounds = array<i64: 16, 128>}]} {
    %c0 = arith.constant 0 : index
    %c0_0 = arith.constant 0 : index
    %0 = vector.load %arg1[%c0, %c0_0] : memref<16x16xbf16, #tpu.memory_space<vmem>>, vector<16x16xbf16>
    %c0_1 = arith.constant 0 : index
    %c0_2 = arith.constant 0 : index
    %1 = vector.load %arg2[%c0_1, %c0_2] : memref<16x512xbf16, #tpu.memory_space<vmem>>, vector<16x512xbf16>
    %cst = arith.constant dense<0.000000e+00> : vector<16x512xf32>
    %2 = tpu.matmul %0, %1, %cst {dimension_numbers = #tpu.dot_dimension_numbers<[1], [0], [0], [1], [0, 0, 1, 1], [], []>} : vector<16x16xbf16>, vector<16x512xbf16>, vector<16x512xf32> -> vector<16x512xf32>
    %c0_3 = arith.constant 0 : index
    %c0_4 = arith.constant 0 : index
    %3 = vector.load %arg3[%c0_3, %c0_4] : memref<1x512xf32, #tpu.memory_space<vmem>>, vector<1x512xf32>
    %4 = vector.broadcast %3 : vector<1x512xf32> to vector<16x512xf32>
    %5 = arith.addf %2, %4 : vector<16x512xf32>
    %6 = math.tanh %5 : vector<16x512xf32>
    %7 = arith.truncf %6 : vector<16x512xf32> to vector<16x512xbf16>
    %c0_5 = arith.constant 0 : index
    %c0_6 = arith.constant 0 : index
    %8 = vector.load %arg4[%c0_5, %c0_6] : memref<512x384xbf16, #tpu.memory_space<vmem>>, vector<512x384xbf16>
    %cst_7 = arith.constant dense<0.000000e+00> : vector<16x384xf32>
    %9 = tpu.matmul %7, %8, %cst_7 {dimension_numbers = #tpu.dot_dimension_numbers<[1], [0], [0], [1], [0, 0, 1, 1], [], []>} : vector<16x512xbf16>, vector<512x384xbf16>, vector<16x384xf32> -> vector<16x384xf32>
    %c0_8 = arith.constant 0 : index
    %c0_9 = arith.constant 0 : index
    %10 = vector.load %arg5[%c0_8, %c0_9] : memref<1x384xf32, #tpu.memory_space<vmem>>, vector<1x384xf32>
    %11 = vector.broadcast %10 : vector<1x384xf32> to vector<16x384xf32>
    %12 = arith.addf %9, %11 : vector<16x384xf32>
    %13 = math.tanh %12 : vector<16x384xf32>
    %14 = arith.truncf %13 : vector<16x384xf32> to vector<16x384xbf16>
    %c0_10 = arith.constant 0 : index
    %c0_11 = arith.constant 0 : index
    %15 = vector.load %arg6[%c0_10, %c0_11] : memref<384x128xbf16, #tpu.memory_space<vmem>>, vector<384x128xbf16>
    %cst_12 = arith.constant dense<0.000000e+00> : vector<16x128xf32>
    %16 = tpu.matmul %14, %15, %cst_12 {dimension_numbers = #tpu.dot_dimension_numbers<[1], [0], [0], [1], [0, 0, 1, 1], [], []>} : vector<16x384xbf16>, vector<384x128xbf16>, vector<16x128xf32> -> vector<16x128xf32>
    %c0_13 = arith.constant 0 : index
    %c0_14 = arith.constant 0 : index
    %17 = vector.load %arg7[%c0_13, %c0_14] : memref<1x128xf32, #tpu.memory_space<vmem>>, vector<1x128xf32>
    %18 = vector.broadcast %17 : vector<1x128xf32> to vector<16x128xf32>
    %19 = arith.addf %16, %18 : vector<16x128xf32>
    %20 = math.tanh %19 : vector<16x128xf32>
    %21 = math.tanh %20 : vector<16x128xf32>
    %c0_15 = arith.constant 0 : index
    %c0_16 = arith.constant 0 : index
    %22 = vector.load %arg8[%c0_15, %c0_16] : memref<16x128xf32, #tpu.memory_space<vmem>>, vector<16x128xf32>
    tpu.vector_store %arg8[%c0_15, %c0_16], %21 {strides = array<i32>} : memref<16x128xf32, #tpu.memory_space<vmem>>, vector<16x128xf32>,
    return
  }
  func.func @transform_0(%arg0: i32) -> (i32, i32) {
    %c0_i32 = arith.constant 0 : i32
    %c0_i32_0 = arith.constant 0 : i32
    return %arg0, %c0_i32 : i32, i32
  }
  func.func @transform_1(%arg0: i32) -> (i32, i32) {
    %c0_i32 = arith.constant 0 : i32
    %c0_i32_0 = arith.constant 0 : i32
    %c0_i32_1 = arith.constant 0 : i32
    return %c0_i32, %c0_i32_0 : i32, i32
  }
  func.func @transform_2(%arg0: i32) -> (i32, i32) {
    %c0_i32 = arith.constant 0 : i32
    %c0_i32_0 = arith.constant 0 : i32
    %c0_i32_1 = arith.constant 0 : i32
    return %c0_i32, %c0_i32_0 : i32, i32
  }
  func.func @transform_3(%arg0: i32) -> (i32, i32) {
    %c0_i32 = arith.constant 0 : i32
    %c0_i32_0 = arith.constant 0 : i32
    %c0_i32_1 = arith.constant 0 : i32
    return %c0_i32, %c0_i32_0 : i32, i32
  }
  func.func @transform_4(%arg0: i32) -> (i32, i32) {
    %c0_i32 = arith.constant 0 : i32
    %c0_i32_0 = arith.constant 0 : i32
    %c0_i32_1 = arith.constant 0 : i32
    return %c0_i32, %c0_i32_0 : i32, i32
  }
  func.func @transform_5(%arg0: i32) -> (i32, i32) {
    %c0_i32 = arith.constant 0 : i32
    %c0_i32_0 = arith.constant 0 : i32
    %c0_i32_1 = arith.constant 0 : i32
    return %c0_i32, %c0_i32_0 : i32, i32
  }
  func.func @transform_6(%arg0: i32) -> (i32, i32) {
    %c0_i32 = arith.constant 0 : i32
    %c0_i32_0 = arith.constant 0 : i32
    %c0_i32_1 = arith.constant 0 : i32
    return %c0_i32, %c0_i32_0 : i32, i32
  }
  func.func @transform_7(%arg0: i32) -> (i32, i32) {
    %c0_i32 = arith.constant 0 : i32
    %c0_i32_0 = arith.constant 0 : i32
    return %arg0, %c0_i32 : i32, i32
  }
}

</mosaic_0001>

<bundles_post_ra>
// kernel: tpu_custom_call.1
= control target key start
LH: loop header
LB: loop body
LE: loop exit
PB: predicated region body
PF: predicated region fallthrough
CT: control target
= control target key end

     0   :  { %12 = vsyncpa [#allocation3], 0  ;;  %s2100_s0 = inlined_call_operand.hbm [shape: bf16[16,16], index: 0, kind: input, shape index: {}]   ;;  %s2101_s1 = inlined_call_operand.hbm [shape: bf16[16,512], index: 1, kind: input, shape index: {}]   ;;  %s2102_s2 = inlined_call_operand.vmem [shape: f32[1,512], index: 2, kind: input, shape index: {}]   ;;  %s2103_s3 = inlined_call_operand.hbm [shape: bf16[512,384], index: 3, kind: input, shape index: {}]   ;;  %s2104_s4 = inlined_call_operand.vmem [shape: f32[1,384], index: 4, kind: input, shape index: {}]   ;;  %s2105_s5 = inlined_call_operand.hbm [shape: bf16[384,128], index: 5, kind: input, shape index: {}]   ;;  %s2106_s6 = inlined_call_operand.vmem [shape: f32[1,128], index: 6, kind: input, shape index: {}]   ;;  %s2107_s7 = inlined_call_operand.hbm [shape: f32[16,128], index: 7, kind: output, shape index: {}]  }
   0x1   :  { %13 = vsyncpa [#allocation6], 0 }
   0x2   :  { %14 = vsyncpa [#allocation9], 0 }
   0x3   :  { %15 = vsyncpa [#allocation4], 0  ;;  %s1938_s24 = smov [#allocation5]   ;;  %s1820_s28 = scalar_lea.hbm %s2101_s1, 512 }
   0x4   :  { %s33_s25 = sshll.u32 %s1938_s24, 4  ;;  %p1821_p0 = scmp.ne.s32.totalorder %s2101_s1, %s1820_s28  ;;  %s34_s25 = int_to_ptr.vmem [resolvable:$true] %s33_s25 }
   0x5   :  { %p1824_p1 = scmp.lt.u32.totalorder %s1820_s28, %s2101_s1 }
   0x7   :  { %p1826_p2 = pnand %p1824_p1, %p1821_p0 }
   0x9   :  { %1829 = shalt.err (!%p1826_p2)
}
   0xa   :  { %s1830_s10 = scalar_lea.vmem %s34_s25, 512  ;;  %p1835_p4 = scmp.lt.s32.totalorder %s34_s25, %s34_s25 }
   0xb   :  { %p1831_p3 = scmp.ne.s32.totalorder %s34_s25, %s1830_s10  ;;  %p1836_p5 = scmp.lt.s32.totalorder %s1830_s10, %s1830_s10 }
   0xd   :  { %p1837_p6 = por %p1836_p5, %p1835_p4 }
   0xf   :  { %p1838_p7 = pnand %p1837_p6, %p1831_p3 }
  0x11   :  { %1841 = shalt.err (!%p1838_p7)
}
  0x12   :  { %s1939_s11 = smov 256   ;;  %s1940_s12 = smov 16  }
  0x13   :  { %39 = dma.hbm_to_vmem [thread:$0]  %s2101_s1, 512, %s34_s25, [#allocation6], %s1939_s11, %s1939_s11, %s1940_s12  }
  0x14   :  { %s1941_s15 = smov [#allocation2]   ;;  %s1842_s19 = scalar_lea.hbm %s2100_s0, 128 }
  0x15   :  { %s21_s16 = sshll.u32 %s1941_s15, 4  ;;  %p1843_p8 = scmp.ne.s32.totalorder %s2100_s0, %s1842_s19  ;;  %s22_s16 = int_to_ptr.vmem [resolvable:$true] %s21_s16 }
  0x16   :  { %p1846_p9 = scmp.lt.u32.totalorder %s1842_s19, %s2100_s0 }
  0x18   :  { %p1848_p10 = pnand %p1846_p9, %p1843_p8 }
  0x1a   :  { %1851 = shalt.err (!%p1848_p10)
}
  0x1b   :  { %s1852_s24 = scalar_lea.vmem %s22_s16, 128  ;;  %p1857_p12 = scmp.lt.s32.totalorder %s22_s16, %s22_s16 }
  0x1c   :  { %p1853_p11 = scmp.ne.s32.totalorder %s22_s16, %s1852_s24  ;;  %p1858_p13 = scmp.lt.s32.totalorder %s1852_s24, %s1852_s24 }
  0x1e   :  { %p1859_p0 = por %p1858_p13, %p1857_p12 }
  0x20   :  { %p1860_p1 = pnand %p1859_p0, %p1853_p11 }
  0x22   :  { %1863 = shalt.err (!%p1860_p1)
}
  0x23   :  { %s1942_s1 = smov 64   ;;  %s1943_s25 = smov 4  }
  0x24   :  { %27 = dma.hbm_to_vmem [thread:$0]  %s2100_s0, 128, %s22_s16, [#allocation3], %s1942_s1, %s1942_s1, %s1943_s25  }
  0x25   :  { %s1944_s28 = smov [#allocation7]   ;;  %s1864_s9 = scalar_lea.hbm %s2103_s3, 12288 }
  0x26   :  { %s47_s29 = sshll.u32 %s1944_s28, 4  ;;  %p1865_p2 = scmp.ne.s32.totalorder %s2103_s3, %s1864_s9  ;;  %s48_s29 = int_to_ptr.vmem [resolvable:$true] %s47_s29 }
  0x27   :  { %p1868_p3 = scmp.lt.u32.totalorder %s1864_s9, %s2103_s3 }
  0x29   :  { %p1870_p4 = pnand %p1868_p3, %p1865_p2 }
  0x2b   :  { %1873 = shalt.err (!%p1870_p4)
}
  0x2c   :  { %s1874_s14 = scalar_lea.vmem %s48_s29, 12288  ;;  %p1879_p6 = scmp.lt.s32.totalorder %s48_s29, %s48_s29 }
  0x2d   :  { %p1875_p5 = scmp.ne.s32.totalorder %s48_s29, %s1874_s14  ;;  %p1880_p7 = scmp.lt.s32.totalorder %s1874_s14, %s1874_s14 }
  0x2f   :  { %p1881_p8 = por %p1880_p7, %p1879_p6 }
  0x31   :  { %p1882_p9 = pnand %p1881_p8, %p1875_p5 }
  0x33   :  { %1885 = shalt.err (!%p1882_p9)
}
  0x34   :  { %s1945_s0 = smov 192   ;;  %s1946_s15 = smov 12  }
  0x35   :  { %53 = dma.hbm_to_vmem [thread:$0]  %s2103_s3, 12288, %s48_s29, [#allocation6], %s1945_s0, %s1945_s0, %s1946_s15  }
  0x36   :  { %s1947_s18 = smov [#allocation8]   ;;  %s1886_s22 = scalar_lea.hbm %s2105_s5, 3072 }
  0x37   :  { %s61_s19 = sshll.u32 %s1947_s18, 4  ;;  %p1887_p10 = scmp.ne.s32.totalorder %s2105_s5, %s1886_s22  ;;  %s62_s19 = int_to_ptr.vmem [resolvable:$true] %s61_s19 }
  0x38   :  { %p1890_p11 = scmp.lt.u32.totalorder %s1886_s22, %s2105_s5 }
  0x3a   :  { %p1892_p12 = pnand %p1890_p11, %p1887_p10 }
  0x3c   :  { %1895 = shalt.err (!%p1892_p12)
}
  0x3d   :  { %s1896_s28 = scalar_lea.vmem %s62_s19, 3072  ;;  %p1901_p0 = scmp.lt.s32.totalorder %s62_s19, %s62_s19 }
  0x3e   :  { %p1897_p13 = scmp.ne.s32.totalorder %s62_s19, %s1896_s28  ;;  %p1902_p1 = scmp.lt.s32.totalorder %s1896_s28, %s1896_s28 }
  0x40   :  { %p1903_p2 = por %p1902_p1, %p1901_p0 }
  0x42   :  { %p1904_p3 = pnand %p1903_p2, %p1897_p13 }
  0x44   :  { %1907 = shalt.err (!%p1904_p3)
}
  0x45   :  { %67 = dma.hbm_to_vmem [thread:$0]  %s2105_s5, 3072, %s62_s19, [#allocation9], %s1942_s1, %s1942_s1, %s1943_s25  }
  0x46   :  { %1930 = dma.done.wait [#allocation3], 128  }
  0x47   :  { %1931 = vsyncadd [#allocation3], 4294967168 }
  0x48   :  { %1932 = dma.done.wait [#allocation6], 12800  }
  0x49   :  { %1933 = vsyncadd [#allocation6], 4294954496 }
  0x4a   :  { %1934 = dma.done.wait [#allocation9], 3072  }
  0x4b   :  { %1935 = vsyncadd [#allocation9], 4294964224  ;;  %v1948_v0 = vmov 0   ;;  %v1625_v1 = vld [vmem:[#allocation5 + $0x4] ss:$16 sps:$4 sm:$0xff]   ;;  %v1628_v3 = vld [vmem:[#allocation2] sm:$0xff]   ;;  %v91_v56 = vlaneseq }
  0x4c   :  { %172 = vmatprep.mubr.bf16.mxu0 %v1948_v0  ;;  %215 = vmatprep.mubr.bf16.mxu1 %v1948_v0  ;;  %v1627_v2 = vld [vmem:[#allocation5] ss:$16 sps:$4 sm:$0xff]   ;;  %vm136_vm0 = vcmask 130048   ;;  %v1629_v4 = vld [vmem:[#allocation5 + $0xc] ss:$16 sps:$4 sm:$0xff]   ;;  %vm1950_vm1 = vmmov 0  }
  0x4d   :  { %140 = vmatprep.subr.bf16.mxu0 %v1625_v1  ;;  %v1631_v5 = vld [vmem:[#allocation5 + $0x8] ss:$16 sps:$4 sm:$0xff]   ;;  %v1632_v6 = vld [vmem:[#allocation7] ss:$12 sps:$4 sm:$0xff]   ;;  %v1634_v7 = vld [vmem:[#allocation7 + $0x4] ss:$12 sps:$4 sm:$0xff]   ;;  %183 = vmatprep.subr.bf16.mxu1 %v1629_v4 }
  0x4e   :  { %141 = vmatpush1.bf16.msra.mxu0 %v1627_v2  ;;  %184 = vmatpush1.bf16.msra.mxu1 %v1631_v5  ;;  %v1637_v8 = vld [vmem:[#allocation7 + $0x1c] ss:$12 sps:$4 sm:$0xff]   ;;  %v1635_v9 = vld [vmem:[#allocation7 + $0x18] ss:$12 sps:$4 sm:$0xff]   ;;  %v1640_v10 = vld [vmem:[#allocation7 + $0x34] ss:$12 sps:$4 sm:$0xff]  }
  0x4f   :  { %895 = vmatprep.subr.bf16.mxu0 %v1634_v7  ;;  %v1638_v11 = vld [vmem:[#allocation7 + $0x30] ss:$12 sps:$4 sm:$0xff]   ;;  %v1643_v12 = vld [vmem:[#allocation7 + $0x4c] ss:$12 sps:$4 sm:$0xff]   ;;  %v1641_v13 = vld [vmem:[#allocation7 + $0x48] ss:$12 sps:$4 sm:$0xff]  }
  0x50   :  { %v1646_v14 = vld [vmem:[#allocation7 + $0x64] ss:$12 sps:$4 sm:$0xff]   ;;  %v1659_v15 = vld [vmem:[#allocation7 + $0xc8] ss:$12 sps:$4 sm:$0xff]   ;;  %v1644_v17 = vld [vmem:[#allocation7 + $0x60] ss:$12 sps:$4 sm:$0xff]  }
  0x51   :  { %1383 = vmatmul.mubr.msk.bf16.vlgmr.msra.gmra.mrb[0].mxu0 %vm136_vm0, %v1628_v3  ;;  %1384 = vmatmul.mubr.msk.bf16.vlgmr.msra.gmra.mrb[0].mxu1 %vm136_vm0, %v1628_v3  ;;  %v1660_v16 = vld [vmem:[#allocation7 + $0x8] ss:$12 sps:$4 sm:$0xff]   ;;  %v1664_v18 = vld [vmem:[#allocation7 + $0xe0] ss:$12 sps:$4 sm:$0xff]   ;;  %v1647_v21 = vld [vmem:[#allocation7 + $0x78] ss:$12 sps:$4 sm:$0xff]  }
  0x52   :  { %896 = vmatpush1.bf16.msra.mxu0 %v1632_v6  ;;  %1506 = vmatprep.subr.bf16.mxu1 %v1659_v15  ;;  %v1665_v19 = vld [vmem:[#allocation7 + $0x20] ss:$12 sps:$4 sm:$0xff]   ;;  %v1649_v20 = vld [vmem:[#allocation7 + $0x7c] ss:$12 sps:$4 sm:$0xff]   ;;  %v1669_v22 = vld [vmem:[#allocation7 + $0xf8] ss:$12 sps:$4 sm:$0xff]  }
  0x53   :  { %897 = vmatprep.subr.bf16.mxu0 %v1637_v8  ;;  %1507 = vmatpush3.bf16.msra.mxu1 %v1660_v16  ;;  %v1670_v23 = vld [vmem:[#allocation7 + $0x38] ss:$12 sps:$4 sm:$0xff]   ;;  %v1652_v24 = vld [vmem:[#allocation7 + $0x94] ss:$12 sps:$4 sm:$0xff]   ;;  %v1650_v25 = vld [vmem:[#allocation7 + $0x90] ss:$12 sps:$4 sm:$0xff]  }
  0x54   :  { %1508 = vmatprep.subr.bf16.mxu1 %v1664_v18  ;;  %v1674_v26 = vld [vmem:[#allocation7 + $0x110] ss:$12 sps:$4 sm:$0xff]   ;;  %v1655_v27 = vld [vmem:[#allocation7 + $0xac] ss:$12 sps:$4 sm:$0xff]   ;;  %v1653_v28 = vld [vmem:[#allocation7 + $0xa8] ss:$12 sps:$4 sm:$0xff]  }
  0x55   :  { %v1658_v29 = vld [vmem:[#allocation7 + $0xc4] ss:$12 sps:$4 sm:$0xff]   ;;  %v1656_v30 = vld [vmem:[#allocation7 + $0xc0] ss:$12 sps:$4 sm:$0xff]   ;;  %v1663_v31 = vld [vmem:[#allocation7 + $0xdc] ss:$12 sps:$4 sm:$0xff]  }
  0x56   :  { %898 = vmatpush1.bf16.msra.mxu0 %v1635_v9  ;;  %v1661_v32 = vld [vmem:[#allocation7 + $0xd8] ss:$12 sps:$4 sm:$0xff]   ;;  %v1668_v33 = vld [vmem:[#allocation7 + $0xf4] ss:$12 sps:$4 sm:$0xff]   ;;  %v1666_v34 = vld [vmem:[#allocation7 + $0xf0] ss:$12 sps:$4 sm:$0xff]  }
  0x57   :  { %899 = vmatprep.subr.bf16.mxu0 %v1640_v10  ;;  %1509 = vmatpush3.bf16.msra.mxu1 %v1665_v19  ;;  %v1673_v35 = vld [vmem:[#allocation7 + $0x10c] ss:$12 sps:$4 sm:$0xff]   ;;  %v1671_v36 = vld [vmem:[#allocation7 + $0x108] ss:$12 sps:$4 sm:$0xff]   ;;  %v1675_v37 = vld [vmem:[#allocation7 + $0x50] ss:$12 sps:$4 sm:$0xff]  }
  0x58   :  { %1510 = vmatprep.subr.bf16.mxu1 %v1669_v22  ;;  %v1678_v38 = vld [vmem:[#allocation7 + $0x124] ss:$12 sps:$4 sm:$0xff]   ;;  %v1679_v39 = vld [vmem:[#allocation7 + $0x128] ss:$12 sps:$4 sm:$0xff]   ;;  %v1676_v40 = vld [vmem:[#allocation7 + $0x120] ss:$12 sps:$4 sm:$0xff]  }
  0x59   :  { %v1680_v41 = vld [vmem:[#allocation7 + $0x68] ss:$12 sps:$4 sm:$0xff]   ;;  %v1684_v43 = vld [vmem:[#allocation7 + $0x140] ss:$12 sps:$4 sm:$0xff]   ;;  %v1681_v44 = vld [vmem:[#allocation7 + $0x138] ss:$12 sps:$4 sm:$0xff]  }
  0x5a   :  { %900 = vmatpush1.bf16.msra.mxu0 %v1638_v11  ;;  %v1683_v42 = vld [vmem:[#allocation7 + $0x13c] ss:$12 sps:$4 sm:$0xff]   ;;  %v1685_v45 = vld [vmem:[#allocation7 + $0x80] ss:$12 sps:$4 sm:$0xff]   ;;  %v1689_v47 = vld [vmem:[#allocation7 + $0x158] ss:$12 sps:$4 sm:$0xff]  }
  0x5b   :  { %901 = vmatprep.subr.bf16.mxu0 %v1643_v12  ;;  %1511 = vmatpush3.bf16.msra.mxu1 %v1670_v23  ;;  %v1688_v46 = vld [vmem:[#allocation7 + $0x154] ss:$12 sps:$4 sm:$0xff]   ;;  %v1686_v48 = vld [vmem:[#allocation7 + $0x150] ss:$12 sps:$4 sm:$0xff]   ;;  %v1690_v49 = vld [vmem:[#allocation7 + $0x98] ss:$12 sps:$4 sm:$0xff]  }
  0x5c   :  { %1512 = vmatprep.subr.bf16.mxu1 %v1674_v26  ;;  %v1693_v50 = vld [vmem:[#allocation7 + $0x16c] ss:$12 sps:$4 sm:$0xff]   ;;  %v1694_v51 = vld [vmem:[#allocation7 + $0x170] ss:$12 sps:$4 sm:$0xff]   ;;  %v1691_v52 = vld [vmem:[#allocation7 + $0x168] ss:$12 sps:$4 sm:$0xff]  }
  0x5d   :  { %v1695_v53 = vld [vmem:[#allocation7 + $0xb0] ss:$12 sps:$4 sm:$0xff]   ;;  %v1699_v55 = vld [vmem:[#allocation7 + $0x248] ss:$12 sps:$4 sm:$0xff]   ;;  %v2048_v57 = vshrl.u32 %v91_v56, 7  ;;  %s1951_s8 = smov [#allocation10]  }
  0x5e   :  { %902 = vmatpush1.bf16.msra.mxu0 %v1641_v13  ;;  %v1698_v54 = vld [vmem:[#allocation7 + $0x184] ss:$12 sps:$4 sm:$0xff]   ;;  %v89_v59 = vld [vmem:[%s2102_s2] sm:$0xf]  ;;  %v1696_v26 = vld [vmem:[#allocation7 + $0x180] ss:$12 sps:$4 sm:$0xff]  }
  0x5f   :  { %903 = vmatprep.subr.bf16.mxu0 %v1646_v14  ;;  %1513 = vmatpush3.bf16.msra.mxu1 %v1675_v37  ;;  %v93_v58 = vsub.s32 0, %v2048_v57  ;;  %v97_v60 = vsub.s32 1, %v2048_v57  ;;  %v101_v61 = vsub.s32 2, %v2048_v57  ;;  %v105_v63 = vsub.s32 3, %v2048_v57  ;;  %v1708_v37 = vld [vmem:[#allocation7 + $0x1b4] ss:$12 sps:$4 sm:$0xff]  }
  0x60   :  { %1514 = vmatprep.subr.bf16.mxu1 %v1679_v39  ;;  %v1706_v39 = vld [vmem:[#allocation7 + $0x1b0] ss:$12 sps:$4 sm:$0xff]   ;;  %v1730_v56 = vld [vmem:[#allocation7 + $0x218] ss:$12 sps:$4 sm:$0xff]   ;;  %s1364_s9 = sshll.u32 %s1951_s8, 4  ;;  %s1365_s9 = int_to_ptr.vmem [resolvable:$true] %s1364_s9 }
  0x61   :  { %v94_v62 = vrot.slane %v89_v59, %v93_v58  ;;  %v98_v0 = vrot.slane %v89_v59, %v97_v60  ;;  %v102_v2 = vrot.slane %v89_v59, %v101_v61  ;;  %v106_v5 = vrot.slane %v89_v59, %v105_v63  ;;  %v1733_v59 = vld [vmem:[#allocation7 + $0x22c] ss:$12 sps:$4 sm:$0xff]   ;;  %v1731_v63 = vld [vmem:[#allocation7 + $0x228] ss:$12 sps:$4 sm:$0xff]   ;;  %v1776_v57 = vld [vmem:[#allocation8 + $0x80] sm:$0xff]   ;;  %p1913_p5 = scmp.lt.s32.totalorder %s1365_s9, %s1365_s9 }
  0x62   :  { %904 = vmatpush1.bf16.msra.mxu0 %v1644_v17 }
  0x63   :  { %905 = vmatprep.subr.bf16.mxu0 %v1649_v20  ;;  %1515 = vmatpush3.bf16.msra.mxu1 %v1680_v41  ;;  %v1713_v41 = vld [vmem:[#allocation7 + $0x1cc] ss:$12 sps:$4 sm:$0xff]  }
  0x64   :  { %1516 = vmatprep.subr.bf16.mxu1 %v1684_v43  ;;  %v1711_v43 = vld [vmem:[#allocation7 + $0x1c8] ss:$12 sps:$4 sm:$0xff]  }
  0x66   :  { %906 = vmatpush1.bf16.msra.mxu0 %v1647_v21 }
  0x67   :  { %907 = vmatprep.subr.bf16.mxu0 %v1652_v24  ;;  %1517 = vmatpush3.bf16.msra.mxu1 %v1685_v45  ;;  %v1718_v45 = vld [vmem:[#allocation7 + $0x1e4] ss:$12 sps:$4 sm:$0xff]  }
  0x68   :  { %1518 = vmatprep.subr.bf16.mxu1 %v1689_v47  ;;  %v1716_v47 = vld [vmem:[#allocation7 + $0x1e0] ss:$12 sps:$4 sm:$0xff]  }
  0x6a   :  { %908 = vmatpush1.bf16.msra.mxu0 %v1650_v25 }
  0x6b   :  { %909 = vmatprep.subr.bf16.mxu0 %v1655_v27  ;;  %1519 = vmatpush3.bf16.msra.mxu1 %v1690_v49  ;;  %v1700_v27 = vld [vmem:[#allocation7 + $0x188] ss:$12 sps:$4 sm:$0xff]  }
  0x6c   :  { %1520 = vmatprep.subr.bf16.mxu1 %v1694_v51  ;;  %v1723_v49 = vld [vmem:[#allocation7 + $0x1fc] ss:$12 sps:$4 sm:$0xff]   ;;  %v1721_v51 = vld [vmem:[#allocation7 + $0x1f8] ss:$12 sps:$4 sm:$0xff]  }
  0x6e   :  { %910 = vmatpush1.bf16.msra.mxu0 %v1653_v28 }
  0x6f   :  { %911 = vmatprep.subr.bf16.mxu0 %v1658_v29  ;;  %1521 = vmatpush3.bf16.msra.mxu1 %v1695_v53  ;;  %v1703_v29 = vld [vmem:[#allocation7 + $0x19c] ss:$12 sps:$4 sm:$0xff]   ;;  %v1728_v53 = vld [vmem:[#allocation7 + $0x214] ss:$12 sps:$4 sm:$0xff]  }
  0x70   :  { %1528 = vmatprep.subr.bf16.mxu1 %v1699_v55  ;;  %v1726_v55 = vld [vmem:[#allocation7 + $0x210] ss:$12 sps:$4 sm:$0xff]  }
  0x72   :  { %912 = vmatpush1.bf16.msra.mxu0 %v1656_v30  ;;  %v1704_v30 = vld [vmem:[#allocation7 + $0x260] ss:$12 sps:$4 sm:$0xff]  }
  0x73   :  { %913 = vmatprep.subr.bf16.mxu0 %v1663_v31 }
  0x76   :  { %914 = vmatpush1.bf16.msra.mxu0 %v1661_v32 }
  0x77   :  { %915 = vmatprep.subr.bf16.mxu0 %v1668_v33 }
  0x7a   :  { %916 = vmatpush1.bf16.msra.mxu0 %v1666_v34  ;;  %v1701_v34 = vld [vmem:[#allocation7 + $0x198] ss:$12 sps:$4 sm:$0xff]  }
  0x7b   :  { %917 = vmatprep.subr.bf16.mxu0 %v1673_v35  ;;  %v1705_v35 = vld [vmem:[#allocation7 + $0x1a0] ss:$12 sps:$4 sm:$0xff]  }
  0x7e   :  { %918 = vmatpush1.bf16.msra.mxu0 %v1671_v36 }
  0x7f   :  { %919 = vmatprep.subr.bf16.mxu0 %v1678_v38  ;;  %v1709_v38 = vld [vmem:[#allocation7 + $0x278] ss:$12 sps:$4 sm:$0xff]  }
  0x82   :  { %920 = vmatpush1.bf16.msra.mxu0 %v1676_v40  ;;  %v1710_v40 = vld [vmem:[#allocation7 + $0x1b8] ss:$12 sps:$4 sm:$0xff]  }
  0x83   :  { %921 = vmatprep.subr.bf16.mxu0 %v1683_v42  ;;  %v1714_v42 = vld [vmem:[#allocation7 + $0x290] ss:$12 sps:$4 sm:$0xff]  }
  0x86   :  { %922 = vmatpush1.bf16.msra.mxu0 %v1681_v44  ;;  %v1715_v44 = vld [vmem:[#allocation7 + $0x1d0] ss:$12 sps:$4 sm:$0xff]  }
  0x87   :  { %923 = vmatprep.subr.bf16.mxu0 %v1688_v46  ;;  %v1719_v46 = vld [vmem:[#allocation7 + $0x2a8] ss:$12 sps:$4 sm:$0xff]  }
  0x8a   :  { %924 = vmatpush1.bf16.msra.mxu0 %v1686_v48  ;;  %v1720_v48 = vld [vmem:[#allocation7 + $0x1e8] ss:$12 sps:$4 sm:$0xff]  }
  0x8b   :  { %925 = vmatprep.subr.bf16.mxu0 %v1693_v50  ;;  %v1724_v50 = vld [vmem:[#allocation7 + $0x2c0] ss:$12 sps:$4 sm:$0xff]  }
  0x8e   :  { %926 = vmatpush1.bf16.msra.mxu0 %v1691_v52  ;;  %v1725_v52 = vld [vmem:[#allocation7 + $0x200] ss:$12 sps:$4 sm:$0xff]  }
  0x8f   :  { %938 = vmatprep.subr.bf16.mxu0 %v1698_v54  ;;  %v1729_v54 = vld [vmem:[#allocation7 + $0x2d8] ss:$12 sps:$4 sm:$0xff]  }
 0x124   :  { %v174_v1 = vpop.f32.mrb[0].mxu0  ;;  %v217_v10 = vpop.f32.mrb[0].mxu1 }
 0x125   :  { %v175_v3 = vadd.f32 %v174_v1, %v94_v62  ;;  %v176_v4 = vpop.f32.mrb[1].mxu0  ;;  %v218_v12 = vadd.f32 %v217_v10, %v102_v2  ;;  %v219_v13 = vpop.f32.mrb[1].mxu1  ;;  %v1738_v1 = vld [vmem:[#allocation7 + $0x244] ss:$12 sps:$4 sm:$0xff]   ;;  %v1748_v10 = vld [vmem:[#allocation7 + $0x2a0] ss:$12 sps:$4 sm:$0xff]  }
 0x126   :  { %v177_v6 = vadd.f32 %v176_v4, %v98_v0  ;;  %v178_v7 = vpop.f32.mrb[2].mxu0  ;;  %v220_v14 = vadd.f32 %v219_v13, %v106_v5  ;;  %v221_v15 = vpop.f32.mrb[2].mxu1  ;;  %v1739_v4 = vld [vmem:[#allocation7 + $0x258] ss:$12 sps:$4 sm:$0xff]   ;;  %v1756_v13 = vld [vmem:[#allocation7 + $0x2d4] ss:$12 sps:$4 sm:$0xff]  }
 0x127   :  { %1784 = vtanh.f32 %v175_v3  ;;  %v179_v8 = vadd.f32 %v178_v7, %v94_v62  ;;  %v180_v9 = vpop.f32.mrb[3].mxu0  ;;  %v222_v16 = vadd.f32 %v221_v15, %v102_v2  ;;  %v223_v17 = vpop.f32.mrb[3].mxu1  ;;  %v1734_v62 = vld [vmem:[#allocation7 + $0x2f0] ss:$12 sps:$4 sm:$0xff]   ;;  %v1736_v2 = vld [vmem:[#allocation7 + $0x240] ss:$12 sps:$4 sm:$0xff]  }
 0x128   :  { %1786 = vtanh.f32 %v177_v6  ;;  %v181_v11 = vadd.f32 %v180_v9, %v98_v0  ;;  %v224_v18 = vadd.f32 %v223_v17, %v106_v5  ;;  %v1735_v0 = vld [vmem:[#allocation7 + $0x230] ss:$12 sps:$4 sm:$0xff]   ;;  %v1744_v5 = vld [vmem:[#allocation7 + $0x274] ss:$12 sps:$4 sm:$0xff]   ;;  %v1747_v7 = vld [vmem:[#allocation7 + $0x28c] ss:$12 sps:$4 sm:$0xff]  }
 0x129   :  { %1788 = vtanh.f32 %v179_v8  ;;  %v1741_v3 = vld [vmem:[#allocation7 + $0x25c] ss:$12 sps:$4 sm:$0xff]   ;;  %v1750_v9 = vld [vmem:[#allocation7 + $0x2a4] ss:$12 sps:$4 sm:$0xff]   ;;  %v1759_v15 = vld [vmem:[#allocation7 + $0x2ec] ss:$12 sps:$4 sm:$0xff]  }
 0x12a   :  { %1790 = vtanh.f32 %v181_v11  ;;  %v1742_v6 = vld [vmem:[#allocation7 + $0x270] ss:$12 sps:$4 sm:$0xff]   ;;  %v1745_v8 = vld [vmem:[#allocation7 + $0x288] ss:$12 sps:$4 sm:$0xff]   ;;  %v1760_v17 = vld [vmem:[#allocation8 + $0x40] sm:$0xff]  }
 0x12b   :  { %1792 = vtanh.f32 %v218_v12  ;;  %v1753_v11 = vld [vmem:[#allocation7 + $0x2bc] ss:$12 sps:$4 sm:$0xff]   ;;  %v1751_v12 = vld [vmem:[#allocation7 + $0x2b8] ss:$12 sps:$4 sm:$0xff]  }
 0x12c   :  { %1794 = vtanh.f32 %v220_v14  ;;  %v1754_v14 = vld [vmem:[#allocation7 + $0x2d0] ss:$12 sps:$4 sm:$0xff]  }
 0x12d   :  { %1796 = vtanh.f32 %v222_v16  ;;  %v1757_v16 = vld [vmem:[#allocation7 + $0x2e8] ss:$12 sps:$4 sm:$0xff]  }
 0x12e   :  { %1798 = vtanh.f32 %v224_v18  ;;  %v1761_v18 = vld [vmem:[#allocation8] sm:$0xff]  }
 0x131   :  { %v1785_v19 = vpop.eup %1784 }
 0x132   :  { %v1787_v20 = vpop.eup %1786 }
 0x133   :  { %v1789_v21 = vpop.eup %1788 }
 0x134   :  { %v1791_v22 = vpop.eup %1790  ;;  %v234_v23 = vpack.c.bf16 %v1789_v21, %v1785_v19  ;;  %v1762_v19 = vld [vmem:[#allocation8 + $0x48] sm:$0xff]   ;;  %v1764_v21 = vld [vmem:[#allocation8 + $0x50] sm:$0xff]  }
 0x135   :  { %v1793_v24 = vpop.eup %1792  ;;  %v235_v25 = vpack.c.bf16 %v1791_v22, %v1787_v20  ;;  %v1763_v20 = vld [vmem:[#allocation8 + $0x8] sm:$0xff]   ;;  %v1765_v22 = vld [vmem:[#allocation8 + $0x10] sm:$0xff]  }
 0x136   :  { %v1795_v28 = vpop.eup %1794 }
 0x137   :  { %v1797_v31 = vpop.eup %1796  ;;  %927 = vmatprep.mubr.bf16.mxu0 %v235_v25  ;;  %1013 = vmatprep.mubr.bf16.mxu1 %v235_v25  ;;  %v1768_v25 = vld [vmem:[#allocation8 + $0x60] sm:$0xff]  }
 0x138   :  { %v1799_v32 = vpop.eup %1798  ;;  %928 = vmatmul.mubr.bf16.vlgmr.msra.gmra.mrb[4].mxu0 %v234_v23  ;;  %1014 = vmatmul.mubr.bf16.vlgmr.msra.gmra.mrb[4].mxu1 %v234_v23  ;;  %v2063_v33 = vpack.c.bf16 %v1797_v31, %v1793_v24  ;;  %v1766_v23 = vld [vmem:[#allocation8 + $0x58] sm:$0xff]  }
 0x139   :  { %939 = vmatpush1.bf16.msra.mxu0 %v1696_v26  ;;  %1529 = vmatpush3.bf16.msra.mxu1 %v1700_v27  ;;  %v237_v36 = vpack.c.bf16 %v1799_v32, %v1795_v28  ;;  %v1767_v24 = vld [vmem:[#allocation8 + $0x18] sm:$0xff]   ;;  %v1769_v26 = vld [vmem:[#allocation8 + $0x20] sm:$0xff]   ;;  %v1770_v27 = vld [vmem:[#allocation8 + $0x68] sm:$0xff]  }
 0x13a   :  { %940 = vmatprep.subr.bf16.mxu0 %v1703_v29  ;;  %1530 = vmatprep.subr.bf16.mxu1 %v1704_v30  ;;  %v1771_v28 = vld [vmem:[#allocation8 + $0x28] sm:$0xff]   ;;  %v1772_v29 = vld [vmem:[#allocation8 + $0x70] sm:$0xff]   ;;  %v1774_v31 = vld [vmem:[#allocation8 + $0x78] sm:$0xff]  }
 0x13b   :  { %1054 = vmatprep.mubr.bf16.mxu1 %v237_v36  ;;  %970 = vmatprep.mubr.bf16.mxu0 %v237_v36  ;;  %v1773_v30 = vld [vmem:[#allocation8 + $0x30] sm:$0xff]   ;;  %v1775_v32 = vld [vmem:[#allocation8 + $0x38] sm:$0xff]  }
 0x13d   :  { %941 = vmatpush1.bf16.msra.mxu0 %v1701_v34  ;;  %1531 = vmatpush3.bf16.msra.mxu1 %v1705_v35 }
 0x13e   :  { %942 = vmatprep.subr.bf16.mxu0 %v1708_v37  ;;  %1532 = vmatprep.subr.bf16.mxu1 %v1709_v38 }
 0x141   :  { %943 = vmatpush1.bf16.msra.mxu0 %v1706_v39  ;;  %1533 = vmatpush3.bf16.msra.mxu1 %v1710_v40  ;;  %v366_v40 = vld [vmem:[%s2104_s4] sm:$0x7] }
 0x142   :  { %944 = vmatprep.subr.bf16.mxu0 %v1713_v41  ;;  %1534 = vmatprep.subr.bf16.mxu1 %v1714_v42  ;;  %v379_v41 = vrot.slane %v366_v40, %v101_v61  ;;  %v375_v61 = vrot.slane %v366_v40, %v97_v60  ;;  %v1777_v60 = vld [vmem:[#allocation8 + $0x88] sm:$0xff]  }
 0x145   :  { %945 = vmatpush1.bf16.msra.mxu0 %v1711_v43  ;;  %1535 = vmatpush3.bf16.msra.mxu1 %v1715_v44 }
 0x146   :  { %946 = vmatprep.subr.bf16.mxu0 %v1718_v45  ;;  %1536 = vmatprep.subr.bf16.mxu1 %v1719_v46 }
 0x149   :  { %947 = vmatpush1.bf16.msra.mxu0 %v1716_v47  ;;  %1537 = vmatpush3.bf16.msra.mxu1 %v1720_v48 }
 0x14a   :  { %948 = vmatprep.subr.bf16.mxu0 %v1723_v49  ;;  %1538 = vmatprep.subr.bf16.mxu1 %v1724_v50 }
 0x14d   :  { %949 = vmatpush1.bf16.msra.mxu0 %v1721_v51  ;;  %1539 = vmatpush3.bf16.msra.mxu1 %v1725_v52 }
 0x14e   :  { %950 = vmatprep.subr.bf16.mxu0 %v1728_v53  ;;  %1540 = vmatprep.subr.bf16.mxu1 %v1729_v54 }
 0x151   :  { %951 = vmatpush1.bf16.msra.mxu0 %v1726_v55  ;;  %1541 = vmatpush3.bf16.msra.mxu1 %v1730_v56  ;;  %v371_v55 = vrot.slane %v366_v40, %v93_v58 }
 0x152   :  { %952 = vmatprep.subr.bf16.mxu0 %v1733_v59  ;;  %1542 = vmatprep.subr.bf16.mxu1 %v1734_v62 }
 0x155   :  { %953 = vmatpush1.bf16.msra.mxu0 %v1731_v63  ;;  %1543 = vmatpush3.bf16.msra.mxu1 %v1735_v0 }
 0x156   :  { %954 = vmatprep.subr.bf16.mxu0 %v1738_v1  ;;  %1550 = vmatprep.subr.bf16.mxu1 %v1760_v17 }
 0x158   :  { %1055 = vmatmul.mubr.bf16.vlgmr.msra.gmra.mrb[8].mxu1 %v2063_v33 }
 0x159   :  { %955 = vmatpush1.bf16.msra.mxu0 %v1736_v2  ;;  %1551 = vmatpush3.bf16.msra.mxu1 %v1761_v18 }
 0x15a   :  { %956 = vmatprep.subr.bf16.mxu0 %v1741_v3  ;;  %1552 = vmatprep.subr.bf16.mxu1 %v1762_v19 }
 0x15d   :  { %957 = vmatpush1.bf16.msra.mxu0 %v1739_v4  ;;  %1553 = vmatpush3.bf16.msra.mxu1 %v1763_v20 }
 0x15e   :  { %958 = vmatprep.subr.bf16.mxu0 %v1744_v5  ;;  %1554 = vmatprep.subr.bf16.mxu1 %v1764_v21  ;;  %v1481_v21 = vld [vmem:[%s2106_s6] ss:$0 sm:$0xff]  ;;  %s1908_s6 = scalar_lea.vmem %s1365_s9, 256 }
 0x15f   :  { %p1909_p4 = scmp.ne.s32.totalorder %s1365_s9, %s1908_s6  ;;  %p1914_p6 = scmp.lt.s32.totalorder %s1908_s6, %s1908_s6 }
 0x161   :  { %959 = vmatpush1.bf16.msra.mxu0 %v1742_v6  ;;  %1555 = vmatpush3.bf16.msra.mxu1 %v1765_v22  ;;  %p1915_p7 = por %p1914_p6, %p1913_p5 }
 0x162   :  { %960 = vmatprep.subr.bf16.mxu0 %v1747_v7  ;;  %1556 = vmatprep.subr.bf16.mxu1 %v1766_v23 }
 0x163   :  { %p1916_p8 = pnand %p1915_p7, %p1909_p4 }
 0x165   :  { %961 = vmatpush1.bf16.msra.mxu0 %v1745_v8  ;;  %1557 = vmatpush3.bf16.msra.mxu1 %v1767_v24 }
 0x166   :  { %962 = vmatprep.subr.bf16.mxu0 %v1750_v9  ;;  %1558 = vmatprep.subr.bf16.mxu1 %v1768_v25  ;;  %v1778_v9 = vld [vmem:[#allocation8 + $0x90] sm:$0xff]  }
 0x169   :  { %963 = vmatpush1.bf16.msra.mxu0 %v1748_v10  ;;  %1559 = vmatpush3.bf16.msra.mxu1 %v1769_v26  ;;  %v1779_v10 = vld [vmem:[#allocation8 + $0x98] sm:$0xff]  }
 0x16a   :  { %964 = vmatprep.subr.bf16.mxu0 %v1753_v11  ;;  %1560 = vmatprep.subr.bf16.mxu1 %v1770_v27  ;;  %v1780_v11 = vld [vmem:[#allocation8 + $0xa0] sm:$0xff]  }
 0x16d   :  { %965 = vmatpush1.bf16.msra.mxu0 %v1751_v12  ;;  %1561 = vmatpush3.bf16.msra.mxu1 %v1771_v28  ;;  %v1781_v12 = vld [vmem:[#allocation8 + $0xa8] sm:$0xff]  }
 0x16e   :  { %966 = vmatprep.subr.bf16.mxu0 %v1756_v13  ;;  %1562 = vmatprep.subr.bf16.mxu1 %v1772_v29  ;;  %v1782_v13 = vld [vmem:[#allocation8 + $0xb0] sm:$0xff]  }
 0x171   :  { %967 = vmatpush1.bf16.msra.mxu0 %v1754_v14  ;;  %1563 = vmatpush3.bf16.msra.mxu1 %v1773_v30  ;;  %v1783_v14 = vld [vmem:[#allocation8 + $0xb8] sm:$0xff]  }
 0x172   :  { %968 = vmatprep.subr.bf16.mxu0 %v1759_v15  ;;  %1564 = vmatprep.subr.bf16.mxu1 %v1774_v31 }
 0x175   :  { %969 = vmatpush1.bf16.msra.mxu0 %v1757_v16  ;;  %1565 = vmatpush3.bf16.msra.mxu1 %v1775_v32 }
 0x178   :  { %971 = vmatmul.mubr.bf16.vlgmr.msra.gmra.mrb[4].mxu0 %v2063_v33  ;;  %v1949_v33 = vmov 0.0  }
 0x179   :  { %1581 = vmatprep.subr.bf16.mxu1 %v1949_v33 }
 0x20b   :  { %v1522_v34 = vpop.f32.mrb[4].mxu1 }
 0x20c   :  { %v1523_v35 = vpop.f32.mrb[5].mxu1 }
 0x20d   :  { %v1524_v36 = vadd.f32 %v1523_v35, %v1522_v34  ;;  %v1525_v37 = vpop.f32.mrb[6].mxu1 }
 0x20e   :  { %v1526_v38 = vpop.f32.mrb[7].mxu1 }
 0x20f   :  { %v1527_v39 = vadd.f32 %v1526_v38, %v1525_v37  ;;  %v1016_v44 = vadd.f32 %v1524_v36, %v379_v41 }
 0x211   :  { %v1019_v48 = vadd.f32 %v1527_v39, %v379_v41 }
 0x22b   :  { %v1544_v42 = vpop.f32.mrb[8].mxu1 }
 0x22c   :  { %v1545_v43 = vpop.f32.mrb[9].mxu1 }
 0x22d   :  { %v1546_v45 = vadd.f32 %v1545_v43, %v1544_v42  ;;  %v1547_v46 = vpop.f32.mrb[10].mxu1 }
 0x22e   :  { %v1548_v47 = vpop.f32.mrb[11].mxu1 }
 0x22f   :  { %v1057_v49 = vadd.f32 %v1546_v45, %v1016_v44  ;;  %v1549_v50 = vadd.f32 %v1548_v47, %v1547_v46 }
 0x231   :  { %v1060_v51 = vadd.f32 %v1549_v50, %v1019_v48  ;;  %1800 = vtanh.f32 %v1057_v49 }
 0x233   :  { %1802 = vtanh.f32 %v1060_v51 }
 0x23b   :  { %v1801_v52 = vpop.eup %1800 }
 0x23d   :  { %v1803_v53 = vpop.eup %1802 }
 0x23e   :  { %v1071_v54 = vpack.c.bf16 %v1803_v53, %v1801_v52 }
 0x24b   :  { %v972_v56 = vpop.f32.mrb[4].mxu0 }
 0x24c   :  { %v1601_v59 = vadd.f32 %v972_v56, %v371_v55  ;;  %v974_v62 = vpop.f32.mrb[5].mxu0 }
 0x24d   :  { %v1602_v63 = vadd.f32 %v974_v62, %v375_v61  ;;  %v976_v0 = vpop.f32.mrb[6].mxu0 }
 0x24e   :  { %1804 = vtanh.f32 %v1601_v59  ;;  %v1603_v1 = vadd.f32 %v976_v0, %v371_v55  ;;  %v978_v2 = vpop.f32.mrb[7].mxu0 }
 0x24f   :  { %1806 = vtanh.f32 %v1602_v63  ;;  %v1604_v3 = vadd.f32 %v978_v2, %v375_v61 }
 0x250   :  { %1808 = vtanh.f32 %v1603_v1 }
 0x251   :  { %1810 = vtanh.f32 %v1604_v3 }
 0x258   :  { %v1805_v4 = vpop.eup %1804 }
 0x259   :  { %v1807_v5 = vpop.eup %1806 }
 0x25a   :  { %v1809_v6 = vpop.eup %1808 }
 0x25b   :  { %v1811_v7 = vpop.eup %1810  ;;  %v1069_v58 = vpack.c.bf16 %v1809_v6, %v1805_v4 }
 0x25c   :  { %v1070_v8 = vpack.c.bf16 %v1811_v7, %v1807_v5 }
 0x25e   :  { %1303 = vmatprep.mubr.bf16.mxu1 %v1070_v8 }
 0x25f   :  { %1304 = vmatmul.mubr.bf16.vlgmr.msra.gmra.mrb[12].mxu1 %v1069_v58 }
 0x260   :  { %1582 = vmatpush3.bf16.msra.mxu1 %v1776_v57  ;;  %1597 = vmatprep.mubr.msk.bf16.mxu1 %vm1950_vm1, %v1949_v33 }
 0x261   :  { %1583 = vmatprep.subr.bf16.mxu1 %v1949_v33 }
 0x264   :  { %1584 = vmatpush3.bf16.msra.mxu1 %v1777_v60 }
 0x265   :  { %1585 = vmatprep.subr.bf16.mxu1 %v1949_v33 }
 0x268   :  { %1586 = vmatpush3.bf16.msra.mxu1 %v1778_v9 }
 0x269   :  { %1587 = vmatprep.subr.bf16.mxu1 %v1949_v33 }
 0x26c   :  { %1588 = vmatpush3.bf16.msra.mxu1 %v1779_v10 }
 0x26d   :  { %1589 = vmatprep.subr.bf16.mxu1 %v1949_v33 }
 0x270   :  { %1590 = vmatpush3.bf16.msra.mxu1 %v1780_v11 }
 0x271   :  { %1591 = vmatprep.subr.bf16.mxu1 %v1949_v33 }
 0x274   :  { %1592 = vmatpush3.bf16.msra.mxu1 %v1781_v12 }
 0x275   :  { %1593 = vmatprep.subr.bf16.mxu1 %v1949_v33 }
 0x278   :  { %1594 = vmatpush3.bf16.msra.mxu1 %v1782_v13 }
 0x279   :  { %1595 = vmatprep.subr.bf16.mxu1 %v1949_v33 }
 0x27c   :  { %1596 = vmatpush3.bf16.msra.mxu1 %v1783_v14 }
 0x27f   :  { %1598 = vmatmul.mubr.bf16.vlgmr.msra.gmra.mrb[16].mxu1 %v1071_v54 }
 0x332   :  { %v1566_v15 = vpop.f32.mrb[12].mxu1 }
 0x333   :  { %v1567_v16 = vpop.f32.mrb[13].mxu1 }
 0x334   :  { %v1568_v17 = vadd.f32 %v1567_v16, %v1566_v15  ;;  %v1569_v18 = vpop.f32.mrb[14].mxu1 }
 0x335   :  { %v1570_v19 = vpop.f32.mrb[15].mxu1 }
 0x336   :  { %v1571_v20 = vadd.f32 %v1570_v19, %v1569_v18  ;;  %v1306_v22 = vadd.f32 %v1568_v17, %v1481_v21 }
 0x338   :  { %v1309_v26 = vadd.f32 %v1571_v20, %v1481_v21 }
 0x352   :  { %v1346_v23 = vpop.f32.mrb[16].mxu1 }
 0x353   :  { %v1347_v24 = vadd.f32 %v1346_v23, %v1306_v22  ;;  %v1599_v25 = vpop.f32.mrb[17].mxu1 }
 0x354   :  { %v1349_v27 = vpop.f32.mrb[18].mxu1 }
 0x355   :  { %1812 = vtanh.f32 %v1347_v24  ;;  %v1350_v28 = vadd.f32 %v1349_v27, %v1309_v26  ;;  %v1600_v29 = vpop.f32.mrb[19].mxu1 }
 0x357   :  { %1814 = vtanh.f32 %v1350_v28 }
 0x35f   :  { %v1813_v30 = vpop.eup %1812 }
 0x360   :  { %1816 = vtanh.f32 %v1813_v30 }
 0x361   :  { %v1815_v31 = vpop.eup %1814 }
 0x362   :  { %1818 = vtanh.f32 %v1815_v31 }
 0x36a   :  { %v1817_v32 = vpop.eup %1816 }
 0x36b   :  { %1357 = vst [vmem:[#allocation10] sm:$0xff] %v1817_v32 }
 0x36c   :  { %v1819_v33 = vpop.eup %1818 }
 0x36d   :  { %1358 = vst [vmem:[#allocation10 + $0x8] sm:$0xff] %v1819_v33 }
 0x36e   :  { %1919 = shalt.err (!%p1916_p8)
}
 0x36f   :  { %s1920_s12 = scalar_lea.hbm %s2107_s7, 256 }
 0x370   :  { %p1921_p9 = scmp.ne.s32.totalorder %s2107_s7, %s1920_s12  ;;  %p1924_p10 = scmp.lt.u32.totalorder %s1920_s12, %s2107_s7 }
 0x372   :  { %p1926_p11 = pnand %p1924_p10, %p1921_p9 }
 0x374   :  { %1929 = shalt.err (!%p1926_p11)
}
 0x375   :  { %s1952_s16 = smov 128   ;;  %s1953_s17 = smov 8  }
 0x376   :  { %1370 = dma.vmem_to_hbm [thread:$0]  %s1365_s9, 256, %s2107_s7, [#allocation4], %s1952_s16, %s1952_s16, %s1953_s17  }
 0x377   :  { %1936 = dma.done.wait [#allocation4], 256  }
 0x378   :  { %1937 = vsyncadd [#allocation4], 4294967040 }
 0x379   :  { %1374 = vsyncpa [#allocation3], 1 }
 0x37a   :  { %1375 = vsyncpa [#allocation6], 1 }
 0x37b   :  { %1376 = vsyncpa [#allocation9], 1 }
 0x37c   :  { %1377 = vsyncpa [#allocation4], 1 }

</bundles_post_ra>
